<compile_context>
chip_gen: v7x
topology: tpu7x:2x2x1
jax: 0.10.0
libtpu: 0.0.40
codegen_flags: <defaults>
</compile_context>

<pallas_src>
from functools import partial

import jax
import jax.numpy as jnp
from jax.experimental import pallas as pl
from jax.experimental.pallas import tpu as pltpu


def deep_kernel(x_ref, w1_ref, b1_ref, w2_ref, b2_ref, w3_ref, b3_ref,
                w4_ref, b4_ref, o_ref):
    # x_ref : (17, TB) bf16  -- batch on the lane axis.
    # wK_ref: PyTorch-layout weights (out_features, in_features), bf16 for MXU.
    # bK_ref: column biases (out_features, 1) f32; b4_ref: (1,) f32 in SMEM.
    x = x_ref[...]                                              # (17, TB) bf16

    # Layer 1: bf16 x bf16 -> f32 accumulate on the MXU.
    h = jnp.dot(w1_ref[...], x, preferred_element_type=jnp.float32)
    h = jnp.maximum(h + b1_ref[...], 0.0)                       # (37, TB) f32

    # Layer 2: cast activations to bf16 at the dot input only.
    h = jnp.dot(w2_ref[...], h.astype(jnp.bfloat16),
                preferred_element_type=jnp.float32)
    h = jnp.maximum(h + b2_ref[...], 0.0)                       # (89, TB) f32

    # Layer 3.
    h = jnp.dot(w3_ref[...], h.astype(jnp.bfloat16),
                preferred_element_type=jnp.float32)
    h = jnp.maximum(h + b3_ref[...], 0.0)                       # (37, TB) f32

    # Output layer (37 -> 1): VPU multiply + sublane reduce -> lane-dense row.
    z = jnp.sum(h * w4_ref[...], axis=0, keepdims=True) + b4_ref[0]   # (1, TB)
    o_ref[...] = jax.nn.sigmoid(z).astype(o_ref.dtype)


def _round_up(n, m):
    return ((n + m - 1) // m) * m


@partial(jax.jit, static_argnames=("max_block_b",))
def deep_forward(x, w1, b1, w2, b2, w3, b3, w4, b4, *, max_block_b=8192):
    """x: (B, 17) f32; weights in PyTorch (out, in) layout; biases 1-D."""
    B, F = x.shape
    assert F == 17

    # Pad the batch only to the 128-lane width.  Partial last tiles are
    # handled by Pallas; OOB lanes are never reduced across and get sliced
    # off below.
    B_pad = _round_up(B, 128)
    # Large batch tile (per-grid-step overhead dominates small tiles), but
    # keep >=2 grid steps when possible so v7x's two TensorCores split the
    # "parallel" batch axis.
    TB = max(128, min(max_block_b, _round_up(pl.cdiv(B_pad, 2), 128)))
    grid = (pl.cdiv(B_pad, TB),)

    # Put the batch on the lane axis; bf16 the dominant HBM stream (x) and
    # every MXU weight.  (This whole relayout fuses under jit.)
    xt = jnp.pad(x, ((0, B_pad - B), (0, 0))).T.astype(jnp.bfloat16)   # (17, B_pad)
    w1b = w1.astype(jnp.bfloat16)                                      # (37, 17)
    w2b = w2.astype(jnp.bfloat16)                                      # (89, 37)
    w3b = w3.astype(jnp.bfloat16)                                      # (37, 89)
    b1c = b1.reshape(-1, 1).astype(jnp.float32)                        # (37, 1)
    b2c = b2.reshape(-1, 1).astype(jnp.float32)                        # (89, 1)
    b3c = b3.reshape(-1, 1).astype(jnp.float32)                        # (37, 1)
    w4c = jnp.transpose(w4.reshape(1, -1)).astype(jnp.float32)         # (37, 1)
    b4s = b4.reshape(-1).astype(jnp.float32)                           # (1,)

    out = pl.pallas_call(
        deep_kernel,
        out_shape=jax.ShapeDtypeStruct((1, B_pad), jnp.bfloat16),
        grid=grid,
        in_specs=[
            pl.BlockSpec((17, TB), lambda i: (0, i)),   # x^T batch tile (pipelined)
            pl.BlockSpec((37, 17), lambda i: (0, 0)),   # W1 (bf16), resident
            pl.BlockSpec((37, 1), lambda i: (0, 0)),    # b1
            pl.BlockSpec((89, 37), lambda i: (0, 0)),   # W2 (bf16)
            pl.BlockSpec((89, 1), lambda i: (0, 0)),    # b2
            pl.BlockSpec((37, 89), lambda i: (0, 0)),   # W3 (bf16)
            pl.BlockSpec((37, 1), lambda i: (0, 0)),    # b3
            pl.BlockSpec((37, 1), lambda i: (0, 0)),    # W4 as a column
            pl.BlockSpec(memory_space=pltpu.MemorySpace.SMEM),  # b4 scalar
        ],
        out_specs=pl.BlockSpec((1, TB), lambda i: (0, i)),      # lane-dense output
        compiler_params=pltpu.CompilerParams(
            dimension_semantics=("parallel",),
            vmem_limit_bytes=48 * 1024 * 1024,
        ),
    )(xt, w1b, b1c, w2b, b2c, w3b, b3c, w4c, b4s)

    return out[0, :B].astype(jnp.float32).reshape(B, 1)


def init_params(key):
    """Deterministic init mimicking nn.Linear's U(-1/sqrt(fan_in), 1/sqrt(fan_in))."""
    dims = [(37, 17), (89, 37), (37, 89), (1, 37)]
    keys = jax.random.split(key, 2 * len(dims))
    params = []
    for idx, (out_f, in_f) in enumerate(dims):
        bound = 1.0 / jnp.sqrt(float(in_f))
        w = jax.random.uniform(keys[2 * idx], (out_f, in_f), jnp.float32, -bound, bound)
        b = jax.random.uniform(keys[2 * idx + 1], (out_f,), jnp.float32, -bound, bound)
        params += [w, b]
    return tuple(params)


if __name__ == "__main__":
    key = jax.random.PRNGKey(0)
    kx, kp = jax.random.split(key)
    B = 64
    x = jax.random.normal(kx, (B, 17), jnp.float32)
    params = init_params(kp)

    out = deep_forward(x, *params)
    jax.block_until_ready(out)

    # Pure-JAX f32 reference (PyTorch semantics: y = x @ W.T + b).
    w1, b1, w2, b2, w3, b3, w4, b4 = params
    h = jnp.maximum(x @ w1.T + b1, 0.0)
    h = jnp.maximum(h @ w2.T + b2, 0.0)
    h = jnp.maximum(h @ w3.T + b3, 0.0)
    ref = jax.nn.sigmoid(h @ w4.T + b4).reshape(B, 1)

    assert out.shape == (B, 1)
    # Loose tolerance accounts for the bf16 matmul inputs / bf16 output store
    # (f32 accumulation; sigmoid output is bounded so the error stays small).
    assert jnp.allclose(out, ref, atol=2e-2, rtol=2e-2), float(jnp.max(jnp.abs(out - ref)))

    print("KERNEL_OK")
</pallas_src>

<mosaic_0001>
module attributes {stable_mosaic.version = 11 : i64} {
  func.func @deep_kernel(%arg0: i32, %arg1: memref<17x128xbf16, #tpu.memory_space<vmem>>, %arg2: memref<37x17xbf16, #tpu.memory_space<vmem>>, %arg3: memref<37x1xf32, #tpu.memory_space<vmem>>, %arg4: memref<89x37xbf16, #tpu.memory_space<vmem>>, %arg5: memref<89x1xf32, #tpu.memory_space<vmem>>, %arg6: memref<37x89xbf16, #tpu.memory_space<vmem>>, %arg7: memref<37x1xf32, #tpu.memory_space<vmem>>, %arg8: memref<37x1xf32, #tpu.memory_space<vmem>>, %arg9: memref<1xf32, #tpu.memory_space<smem>>, %arg10: memref<1x128xbf16, #tpu.memory_space<vmem>>) attributes {dimension_semantics = [#tpu.dimension_semantics<parallel>], iteration_bounds = array<i64: 1>, scalar_prefetch = 0 : i64, scratch_operands = 0 : i64, tpu.core_type = #tpu.core_type<tc>, window_params = [{transform_indices = @transform_0, window_bounds = array<i64: 17, 128>}, {pipeline_mode = #tpu.pipeline_mode<synchronous>, transform_indices = @transform_1, window_bounds = array<i64: 37, 17>}, {pipeline_mode = #tpu.pipeline_mode<synchronous>, transform_indices = @transform_2, window_bounds = array<i64: 37, 1>}, {pipeline_mode = #tpu.pipeline_mode<synchronous>, transform_indices = @transform_3, window_bounds = array<i64: 89, 37>}, {pipeline_mode = #tpu.pipeline_mode<synchronous>, transform_indices = @transform_4, window_bounds = array<i64: 89, 1>}, {pipeline_mode = #tpu.pipeline_mode<synchronous>, transform_indices = @transform_5, window_bounds = array<i64: 37, 89>}, {pipeline_mode = #tpu.pipeline_mode<synchronous>, transform_indices = @transform_6, window_bounds = array<i64: 37, 1>}, {pipeline_mode = #tpu.pipeline_mode<synchronous>, transform_indices = @transform_7, window_bounds = array<i64: 37, 1>}, {transform_indices = @transform_8, window_bounds = array<i64: 1>}, {transform_indices = @transform_9, window_bounds = array<i64: 1, 128>}]} {
    %c0 = arith.constant 0 : index
    %c0_0 = arith.constant 0 : index
    %0 = vector.load %arg1[%c0, %c0_0] : memref<17x128xbf16, #tpu.memory_space<vmem>>, vector<17x128xbf16>
    %c0_1 = arith.constant 0 : index
    %c0_2 = arith.constant 0 : index
    %1 = vector.load %arg2[%c0_1, %c0_2] : memref<37x17xbf16, #tpu.memory_space<vmem>>, vector<37x17xbf16>
    %cst = arith.constant dense<0.000000e+00> : vector<37x128xf32>
    %2 = tpu.matmul %1, %0, %cst {dimension_numbers = #tpu.dot_dimension_numbers<[1], [0], [0], [1], [0, 0, 1, 1], [], []>} : vector<37x17xbf16>, vector<17x128xbf16>, vector<37x128xf32> -> vector<37x128xf32>
    %c0_3 = arith.constant 0 : index
    %c0_4 = arith.constant 0 : index
    %3 = vector.load %arg3[%c0_3, %c0_4] : memref<37x1xf32, #tpu.memory_space<vmem>>, vector<37x1xf32>
    %4 = vector.broadcast %3 : vector<37x1xf32> to vector<37x128xf32>
    %5 = arith.addf %2, %4 : vector<37x128xf32>
    %cst_5 = arith.constant 0.000000e+00 : f32
    %6 = vector.broadcast %cst_5 : f32 to vector<37x128xf32>
    %7 = arith.maximumf %5, %6 : vector<37x128xf32>
    %c0_6 = arith.constant 0 : index
    %c0_7 = arith.constant 0 : index
    %8 = vector.load %arg4[%c0_6, %c0_7] : memref<89x37xbf16, #tpu.memory_space<vmem>>, vector<89x37xbf16>
    %9 = arith.truncf %7 : vector<37x128xf32> to vector<37x128xbf16>
    %cst_8 = arith.constant dense<0.000000e+00> : vector<89x128xf32>
    %10 = tpu.matmul %8, %9, %cst_8 {dimension_numbers = #tpu.dot_dimension_numbers<[1], [0], [0], [1], [0, 0, 1, 1], [], []>} : vector<89x37xbf16>, vector<37x128xbf16>, vector<89x128xf32> -> vector<89x128xf32>
    %c0_9 = arith.constant 0 : index
    %c0_10 = arith.constant 0 : index
    %11 = vector.load %arg5[%c0_9, %c0_10] : memref<89x1xf32, #tpu.memory_space<vmem>>, vector<89x1xf32>
    %12 = vector.broadcast %11 : vector<89x1xf32> to vector<89x128xf32>
    %13 = arith.addf %10, %12 : vector<89x128xf32>
    %cst_11 = arith.constant 0.000000e+00 : f32
    %14 = vector.broadcast %cst_11 : f32 to vector<89x128xf32>
    %15 = arith.maximumf %13, %14 : vector<89x128xf32>
    %c0_12 = arith.constant 0 : index
    %c0_13 = arith.constant 0 : index
    %16 = vector.load %arg6[%c0_12, %c0_13] : memref<37x89xbf16, #tpu.memory_space<vmem>>, vector<37x89xbf16>
    %17 = arith.truncf %15 : vector<89x128xf32> to vector<89x128xbf16>
    %cst_14 = arith.constant dense<0.000000e+00> : vector<37x128xf32>
    %18 = tpu.matmul %16, %17, %cst_14 {dimension_numbers = #tpu.dot_dimension_numbers<[1], [0], [0], [1], [0, 0, 1, 1], [], []>} : vector<37x89xbf16>, vector<89x128xbf16>, vector<37x128xf32> -> vector<37x128xf32>
    %c0_15 = arith.constant 0 : index
    %c0_16 = arith.constant 0 : index
    %19 = vector.load %arg7[%c0_15, %c0_16] : memref<37x1xf32, #tpu.memory_space<vmem>>, vector<37x1xf32>
    %20 = vector.broadcast %19 : vector<37x1xf32> to vector<37x128xf32>
    %21 = arith.addf %18, %20 : vector<37x128xf32>
    %cst_17 = arith.constant 0.000000e+00 : f32
    %22 = vector.broadcast %cst_17 : f32 to vector<37x128xf32>
    %23 = arith.maximumf %21, %22 : vector<37x128xf32>
    %c0_18 = arith.constant 0 : index
    %c0_19 = arith.constant 0 : index
    %24 = vector.load %arg8[%c0_18, %c0_19] : memref<37x1xf32, #tpu.memory_space<vmem>>, vector<37x1xf32>
    %25 = vector.broadcast %24 : vector<37x1xf32> to vector<37x128xf32>
    %26 = arith.mulf %23, %25 : vector<37x128xf32>
    %cst_20 = arith.constant dense<0.000000e+00> : vector<128xf32>
    %27 = vector.multi_reduction <add>, %26, %cst_20 [0] : vector<37x128xf32> to vector<128xf32>
    %28 = vector.shape_cast %27 : vector<128xf32> to vector<1x128xf32>
    %c0_21 = arith.constant 0 : index
    %29 = memref.load %arg9[%c0_21] : memref<1xf32, #tpu.memory_space<smem>>
    %30 = vector.broadcast %29 : f32 to vector<1x128xf32>
    %31 = arith.addf %28, %30 : vector<1x128xf32>
    %32 = arith.negf %31 : vector<1x128xf32>
    %33 = math.exp %32 : vector<1x128xf32>
    %cst_22 = arith.constant 1.000000e+00 : f32
    %34 = vector.broadcast %cst_22 : f32 to vector<1x128xf32>
    %35 = arith.addf %34, %33 : vector<1x128xf32>
    %36 = arith.divf %34, %35 : vector<1x128xf32>
    %37 = arith.truncf %36 : vector<1x128xf32> to vector<1x128xbf16>
    %c0_23 = arith.constant 0 : index
    %c0_24 = arith.constant 0 : index
    %38 = vector.load %arg10[%c0_23, %c0_24] : memref<1x128xbf16, #tpu.memory_space<vmem>>, vector<1x128xbf16>
    tpu.vector_store %arg10[%c0_23, %c0_24], %37 {strides = array<i32>} : memref<1x128xbf16, #tpu.memory_space<vmem>>, vector<1x128xbf16>,
    return
  }
  func.func @transform_0(%arg0: i32) -> (i32, i32) {
    %c0_i32 = arith.constant 0 : i32
    %c0_i32_0 = arith.constant 0 : i32
    return %c0_i32, %arg0 : i32, i32
  }
  func.func @transform_1(%arg0: i32) -> (i32, i32) {
    %c0_i32 = arith.constant 0 : i32
    %c0_i32_0 = arith.constant 0 : i32
    %c0_i32_1 = arith.constant 0 : i32
    return %c0_i32, %c0_i32_0 : i32, i32
  }
  func.func @transform_2(%arg0: i32) -> (i32, i32) {
    %c0_i32 = arith.constant 0 : i32
    %c0_i32_0 = arith.constant 0 : i32
    %c0_i32_1 = arith.constant 0 : i32
    return %c0_i32, %c0_i32_0 : i32, i32
  }
  func.func @transform_3(%arg0: i32) -> (i32, i32) {
    %c0_i32 = arith.constant 0 : i32
    %c0_i32_0 = arith.constant 0 : i32
    %c0_i32_1 = arith.constant 0 : i32
    return %c0_i32, %c0_i32_0 : i32, i32
  }
  func.func @transform_4(%arg0: i32) -> (i32, i32) {
    %c0_i32 = arith.constant 0 : i32
    %c0_i32_0 = arith.constant 0 : i32
    %c0_i32_1 = arith.constant 0 : i32
    return %c0_i32, %c0_i32_0 : i32, i32
  }
  func.func @transform_5(%arg0: i32) -> (i32, i32) {
    %c0_i32 = arith.constant 0 : i32
    %c0_i32_0 = arith.constant 0 : i32
    %c0_i32_1 = arith.constant 0 : i32
    return %c0_i32, %c0_i32_0 : i32, i32
  }
  func.func @transform_6(%arg0: i32) -> (i32, i32) {
    %c0_i32 = arith.constant 0 : i32
    %c0_i32_0 = arith.constant 0 : i32
    %c0_i32_1 = arith.constant 0 : i32
    return %c0_i32, %c0_i32_0 : i32, i32
  }
  func.func @transform_7(%arg0: i32) -> (i32, i32) {
    %c0_i32 = arith.constant 0 : i32
    %c0_i32_0 = arith.constant 0 : i32
    %c0_i32_1 = arith.constant 0 : i32
    return %c0_i32, %c0_i32_0 : i32, i32
  }
  func.func @transform_8(%arg0: i32) -> i32 {
    %c0_i32 = arith.constant 0 : i32
    %c0_i32_0 = arith.constant 0 : i32
    return %c0_i32 : i32
  }
  func.func @transform_9(%arg0: i32) -> (i32, i32) {
    %c0_i32 = arith.constant 0 : i32
    %c0_i32_0 = arith.constant 0 : i32
    return %c0_i32, %arg0 : i32, i32
  }
}

</mosaic_0001>

<bundles_post_ra>
// kernel: deep_forward.1
= control target key start
LH: loop header
LB: loop body
LE: loop exit
PB: predicated region body
PF: predicated region fallthrough
CT: control target
= control target key end

     0   :  { %vm104_vm0 = vcmask 1040384   ;;  %v749_v0 = vmov 0.0   ;;  %v750_v2 = vmov 0   ;;  %vm751_vm1 = vmmov 0   ;;  %s976_s0 = inlined_call_operand.vmem [shape: bf16[17,128], index: 0, kind: input, shape index: {}]   ;;  %s977_s1 = inlined_call_operand.vmem [shape: bf16[37,17], index: 1, kind: input, shape index: {}]   ;;  %s978_s2 = inlined_call_operand.vmem [shape: f32[37,1], index: 2, kind: input, shape index: {}]   ;;  %s979_s4 = inlined_call_operand.vmem [shape: f32[89,1], index: 4, kind: input, shape index: {}]   ;;  %s980_s6 = inlined_call_operand.vmem [shape: f32[37,1], index: 6, kind: input, shape index: {}]   ;;  %s981_s7 = inlined_call_operand.vmem [shape: f32[37,1], index: 7, kind: input, shape index: {}]   ;;  %s982_s3 = inlined_call_operand.vmem [shape: bf16[89,37], index: 3, kind: input, shape index: {}]   ;;  %s983_s5 = inlined_call_operand.vmem [shape: bf16[37,89], index: 5, kind: input, shape index: {}]   ;;  %s984_s8 = inlined_call_operand.<no memory space> [shape: f32[1], index: 8, kind: input, shape index: {}]   ;;  %s985_s9 = inlined_call_operand.vmem [shape: bf16[1,128], index: 9, kind: output, shape index: {}]  }
   0x1   :  { %655 = vmatprep.subr.bf16.mxu0 %v749_v0  ;;  %v731_v1 = vld [vmem:[%s976_s0] sm:$0xff]   ;;  %v106_v3 = vsel %vm104_vm0, 65535, %v750_v2  ;;  %729 = vset.pattern.permute.xlu0 %v750_v2  ;;  %v732_v4 = vld [vmem:[%s976_s0 + $0x8] ss:$0 sps:$4 sm:$0x11]   ;;  %v44_v8 = vld [vmem:[%s978_s2 + $0x10] sm:$0xff] }
   0x2   :  { %730 = vset.pattern.permute.xlu1 %v750_v2  ;;  %656 = vmatpush3.bf16.msra.mxu0 %v731_v1  ;;  %v108_v5 = vand.u32 %v732_v4, %v106_v3  ;;  %v42_v6 = vld [vmem:[%s978_s2] sm:$0xff]  ;;  %vm94_vm2 = vcmask 138240   ;;  %v43_v9 = vld [vmem:[%s978_s2 + $0x8] sm:$0xff]  ;;  %v45_v10 = vld [vmem:[%s978_s2 + $0x18] sm:$0xff]  ;;  %vm288_vm3 = vcmask 302080   ;;  %vm307_vm4 = vcmask 1041408  }
   0x3   :  { %659 = vmatprep.mubr.msk.bf16.mxu0 %vm751_vm1, %v749_v0  ;;  %657 = vmatprep.subr.bf16.mxu0 %v749_v0  ;;  %v733_v7 = vld [vmem:[%s977_s1] sm:$0xff]   ;;  %v734_v13 = vld [vmem:[%s977_s1 + $0x8] sm:$0xff]   ;;  %v188_v15 = vld [vmem:[%s979_s4 + $0x10] sm:$0xff]  ;;  %vm308_vm5 = vcmask 1042432   ;;  %v752_v62 = vmov 65535   ;;  %vm471_vm6 = vcmask 1043456  }
   0x4   :  { %49 = vperm.xlu0 %729, %v42_v6   ;;  %59 = vperm.xlu1 %730, %v44_v8   ;;  %v46_v11 = vld [vmem:[%s978_s2 + $0x20] sm:$0x1f]  ;;  %v187_v14 = vld [vmem:[%s979_s4 + $0x8] sm:$0xff]  ;;  %v189_v16 = vld [vmem:[%s979_s4 + $0x18] sm:$0xff]  ;;  %v309_v63 = vsel %vm307_vm4, 4294967295, %v752_v62  ;;  %vm472_vm7 = vcmask 1044480  }
   0x5   :  { %v186_v12 = vld [vmem:[%s979_s4] sm:$0xff]  ;;  %v735_v18 = vld [vmem:[%s977_s1 + $0x10] ss:$0 sps:$4 sm:$0x77]   ;;  %v191_v19 = vld [vmem:[%s979_s4 + $0x28] sm:$0xff]  ;;  %vm461_vm8 = vcmask 728064  }
   0x6   :  { %658 = vmatpush3.bf16.msra.mxu0 %v108_v5  ;;  %v190_v17 = vld [vmem:[%s979_s4 + $0x20] sm:$0xff]  ;;  %v192_v20 = vld [vmem:[%s979_s4 + $0x30] sm:$0xff]  ;;  %v193_v21 = vld [vmem:[%s979_s4 + $0x38] sm:$0xff]  ;;  %v310_v5 = vsel %vm308_vm5, %v309_v63, 0  ;;  %vm596_vm9 = vsmask.f32 256 }
   0x7   :  { %689 = vmatprep.subr.bf16.mxu0 %v749_v0  ;;  %v194_v22 = vld [vmem:[%s979_s4 + $0x40] sm:$0xff]  ;;  %v195_v23 = vld [vmem:[%s979_s4 + $0x48] sm:$0xff]  ;;  %v196_v24 = vld [vmem:[%s979_s4 + $0x50] sm:$0xff] }
   0x8   :  { %54 = vperm.xlu0 %729, %v43_v9   ;;  %64 = vperm.xlu1 %730, %v45_v10   ;;  %v197_v25 = vld [vmem:[%s979_s4 + $0x58] sm:$0x1]  ;;  %v418_v26 = vld [vmem:[%s980_s6] sm:$0xff]  ;;  %v419_v27 = vld [vmem:[%s980_s6 + $0x8] sm:$0xff] }
   0x9   :  { %660 = vmatmul.mubr.msk.bf16.vlgmr.msra.gmra.mrb[0].mxu0 %vm94_vm2, %v733_v7  ;;  %v420_v28 = vld [vmem:[%s980_s6 + $0x10] sm:$0xff]  ;;  %v421_v29 = vld [vmem:[%s980_s6 + $0x18] sm:$0xff]  ;;  %v539_v30 = vld [vmem:[%s981_s7] sm:$0xff] }
   0xa   :  { %663 = vmatprep.mubr.msk.bf16.mxu0 %vm751_vm1, %v749_v0  ;;  %v540_v31 = vld [vmem:[%s981_s7 + $0x8] sm:$0xff]  ;;  %v422_v32 = vld [vmem:[%s980_s6 + $0x20] sm:$0x1f]  ;;  %v541_v33 = vld [vmem:[%s981_s7 + $0x10] sm:$0xff] }
   0xb   :  { %v542_v34 = vld [vmem:[%s981_s7 + $0x18] sm:$0xff]  ;;  %v543_v35 = vld [vmem:[%s981_s7 + $0x20] sm:$0x1f]  ;;  %v737_v8 = vld [vmem:[%s982_s3 + $0x8] sm:$0xff]  }
   0xc   :  { %69 = vperm.xlu0 %729, %v46_v11   ;;  %200 = vperm.xlu1 %730, %v186_v12   ;;  %v736_v36 = vld [vmem:[%s982_s3] sm:$0xff]   ;;  %v738_v9 = vld [vmem:[%s982_s3 + $0x10] sm:$0xff]   ;;  %v739_v10 = vld [vmem:[%s982_s3 + $0x18] sm:$0xff]  }
   0xd   :  { %677 = vmatprep.mubr.msk.bf16.mxu1 %vm288_vm3, %v736_v36  ;;  %v740_v11 = vld [vmem:[%s982_s3 + $0x20] sm:$0xff]   ;;  %v741_v12 = vld [vmem:[%s982_s3 + $0x28] sm:$0x1f]   ;;  %vm597_vm10 = vmand %vm104_vm0, %vm596_vm9 }
  0x10   :  { %205 = vperm.xlu0 %729, %v187_v14   ;;  %210 = vperm.xlu1 %730, %v188_v15  }
  0x11   :  { %664 = vmatmul.mubr.msk.bf16.gmra.mrb[4].mxu0 %vm94_vm2, %v734_v13 }
  0x12   :  { %667 = vmatprep.mubr.msk.bf16.mxu0 %vm751_vm1, %v749_v0 }
  0x14   :  { %215 = vperm.xlu0 %729, %v189_v16   ;;  %220 = vperm.xlu1 %730, %v190_v17  }
  0x18   :  { %225 = vperm.xlu0 %729, %v191_v19   ;;  %230 = vperm.xlu1 %730, %v192_v20  }
  0x19   :  { %668 = vmatmul.mubr.msk.bf16.gmra.mrb[8].mxu0 %vm94_vm2, %v735_v18 }
  0x1a   :  { %701 = vmatprep.mubr.msk.bf16.mxu0 %vm751_vm1, %v749_v0 }
  0x1c   :  { %235 = vperm.xlu0 %729, %v193_v21   ;;  %240 = vperm.xlu1 %730, %v194_v22  }
  0x20   :  { %245 = vperm.xlu0 %729, %v195_v23   ;;  %250 = vperm.xlu1 %730, %v196_v24  }
  0x24   :  { %255 = vperm.xlu0 %729, %v197_v25   ;;  %425 = vperm.xlu1 %730, %v418_v26  }
  0x28   :  { %430 = vperm.xlu0 %729, %v419_v27   ;;  %435 = vperm.xlu1 %730, %v420_v28  }
  0x2c   :  { %440 = vperm.xlu0 %729, %v421_v29   ;;  %546 = vperm.xlu1 %730, %v539_v30  }
  0x30   :  { %551 = vperm.xlu0 %729, %v540_v31   ;;  %445 = vperm.xlu1 %730, %v422_v32  }
  0x34   :  { %556 = vperm.xlu0 %729, %v541_v33   ;;  %561 = vperm.xlu1 %730, %v542_v34  }
  0x38   :  { %566 = vperm.xlu0 %729, %v543_v35  }
  0x83   :  { %v50_v37 = vpop.permute.xlu0 %49  ;;  %v60_v45 = vpop.permute.xlu1 %59 }
  0x87   :  { %v55_v41 = vpop.permute.xlu0 %54  ;;  %v65_v52 = vpop.permute.xlu1 %64 }
  0x8b   :  { %v70_v59 = vpop.permute.xlu0 %69  ;;  %v201_v13 = vpop.permute.xlu1 %200 }
  0x8f   :  { %v206_v14 = vpop.permute.xlu0 %205  ;;  %v211_v15 = vpop.permute.xlu1 %210 }
  0x93   :  { %v216_v16 = vpop.permute.xlu0 %215  ;;  %v221_v17 = vpop.permute.xlu1 %220 }
  0x97   :  { %v226_v18 = vpop.permute.xlu0 %225  ;;  %v231_v26 = vpop.permute.xlu1 %230 }
  0x9b   :  { %v236_v30 = vpop.permute.xlu0 %235 }
  0xdc   :  { %v144_v38 = vpop.f32.mrb[0].mxu0 }
  0xdd   :  { %v145_v39 = vadd.f32 %v144_v38, %v50_v37  ;;  %v661_v40 = vpop.f32.mrb[1].mxu0  ;;  %v241_v38 = vpop.permute.xlu1 %240 }
  0xde   :  { %v147_v42 = vpop.f32.mrb[2].mxu0 }
  0xdf   :  { %v148_v43 = vadd.f32 %v147_v42, %v55_v41  ;;  %v662_v44 = vpop.f32.mrb[3].mxu0  ;;  %v166_v46 = vmax.f32 %v145_v39, 0.0 }
  0xe1   :  { %v167_v47 = vmax.f32 %v148_v43, 0.0  ;;  %v246_v43 = vpop.permute.xlu0 %245 }
  0xe3   :  { %v183_v48 = vpack.c.bf16 %v167_v47, %v166_v46 }
  0xe4   :  { %v152_v49 = vpop.f32.mrb[4].mxu0 }
  0xe5   :  { %v153_v50 = vadd.f32 %v152_v49, %v60_v45  ;;  %v665_v51 = vpop.f32.mrb[5].mxu0  ;;  %671 = vmatprep.subr.bf16.mxu1 %v183_v48 }
  0xe6   :  { %v155_v53 = vpop.f32.mrb[6].mxu0  ;;  %672 = vmatpush3.bf16.msra.mxu1 %v183_v48 }
  0xe7   :  { %v156_v54 = vadd.f32 %v155_v53, %v65_v52  ;;  %v666_v55 = vpop.f32.mrb[7].mxu0  ;;  %v168_v56 = vmax.f32 %v153_v50, 0.0  ;;  %v251_v50 = vpop.permute.xlu1 %250 }
  0xe8   :  { %v256_v55 = vpop.permute.xlu0 %255 }
  0xe9   :  { %v169_v57 = vmax.f32 %v156_v54, 0.0 }
  0xeb   :  { %v184_v58 = vpack.c.bf16 %v169_v57, %v168_v56 }
  0xec   :  { %v160_v60 = vpop.f32.mrb[8].mxu0 }
  0xed   :  { %v161_v61 = vadd.f32 %v160_v60, %v70_v59  ;;  %v669_v1 = vpop.f32.mrb[9].mxu0  ;;  %673 = vmatprep.subr.bf16.mxu1 %v184_v58 }
  0xee   :  { %v163_v2 = vpop.f32.mrb[10].mxu0  ;;  %674 = vmatpush3.bf16.msra.mxu1 %v184_v58 }
  0xef   :  { %v170_v3 = vmax.f32 %v161_v61, 0.0  ;;  %v670_v4 = vpop.f32.mrb[11].mxu0  ;;  %v473_v2 = vsel %vm471_vm6, 4294967295, %v752_v62  ;;  %v742_v62 = vld [vmem:[%s983_s5] sm:$0xff]  }
  0xf1   :  { %v185_v6 = vpack.c.bf16 %v170_v3, %v170_v3 }
  0xf3   :  { %v312_v7 = vand.u32 %v310_v5, %v185_v6  ;;  %v474_v6 = vsel %vm472_vm7, %v473_v2, 0 }
  0xf5   :  { %675 = vmatprep.subr.bf16.mxu1 %v312_v7 }
  0xf6   :  { %676 = vmatpush3.bf16.msra.mxu1 %v312_v7 }
  0xf7   :  { %713 = vmatprep.subr.bf16.mxu1 %v749_v0 }
  0xf9   :  { %678 = vmatmul.mubr.msk.bf16.vlgmr.msra.gmra.mrb[0].mxu1 %vm288_vm3, %v737_v8  ;;  %v743_v8 = vld [vmem:[%s983_s5 + $0x10] ss:$0 sps:$4 sm:$0x77]  }
  0xfa   :  { %681 = vmatprep.mubr.msk.bf16.mxu1 %vm288_vm3, %v738_v9  ;;  %v744_v9 = vld [vmem:[%s983_s5 + $0x8] sm:$0xff]  }
 0x101   :  { %682 = vmatmul.mubr.msk.bf16.gmra.mrb[4].mxu1 %vm288_vm3, %v739_v10  ;;  %v431_v10 = vpop.permute.xlu0 %430 }
 0x102   :  { %685 = vmatprep.mubr.msk.bf16.mxu1 %vm288_vm3, %v740_v11  ;;  %v426_v11 = vpop.permute.xlu1 %425 }
 0x109   :  { %686 = vmatmul.mubr.msk.bf16.gmra.mrb[8].mxu1 %vm288_vm3, %v741_v12  ;;  %v441_v12 = vpop.permute.xlu0 %440 }
 0x10a   :  { %709 = vmatprep.mubr.msk.bf16.mxu1 %vm751_vm1, %v749_v0 }
 0x1cc   :  { %v679_v19 = vpop.f32.mrb[0].mxu1 }
 0x1cd   :  { %v357_v20 = vadd.f32 %v679_v19, %v211_v15  ;;  %v348_v21 = vpop.f32.mrb[1].mxu1 }
 0x1ce   :  { %v349_v22 = vadd.f32 %v348_v21, %v201_v13  ;;  %v680_v23 = vpop.f32.mrb[2].mxu1  ;;  %v436_v13 = vpop.permute.xlu1 %435 }
 0x1cf   :  { %v360_v24 = vadd.f32 %v680_v23, %v216_v16  ;;  %v351_v25 = vpop.f32.mrb[3].mxu1  ;;  %v397_v28 = vmax.f32 %v357_v20, 0.0 }
 0x1d0   :  { %v352_v27 = vadd.f32 %v351_v25, %v206_v14  ;;  %v395_v31 = vmax.f32 %v349_v22, 0.0  ;;  %v552_v14 = vpop.permute.xlu0 %551 }
 0x1d1   :  { %v398_v29 = vmax.f32 %v360_v24, 0.0 }
 0x1d2   :  { %v396_v32 = vmax.f32 %v352_v27, 0.0  ;;  %v547_v15 = vpop.permute.xlu1 %546 }
 0x1d3   :  { %v413_v33 = vpack.c.bf16 %v398_v29, %v397_v28 }
 0x1d4   :  { %v412_v34 = vpack.c.bf16 %v396_v32, %v395_v31  ;;  %v683_v35 = vpop.f32.mrb[4].mxu1  ;;  %v557_v29 = vpop.permute.xlu0 %556 }
 0x1d5   :  { %v373_v36 = vadd.f32 %v683_v35, %v231_v26  ;;  %v364_v37 = vpop.f32.mrb[5].mxu1 }
 0x1d6   :  { %v365_v39 = vadd.f32 %v364_v37, %v221_v17  ;;  %v684_v40 = vpop.f32.mrb[6].mxu1  ;;  %690 = vmatpush3.bf16.msra.mxu0 %v412_v34  ;;  %719 = vmatpush3.bf16.msra.mxu1 %v412_v34  ;;  %v446_v26 = vpop.permute.xlu1 %445 }
 0x1d7   :  { %v376_v41 = vadd.f32 %v684_v40, %v236_v30  ;;  %v367_v42 = vpop.f32.mrb[7].mxu1  ;;  %691 = vmatprep.subr.bf16.mxu0 %v749_v0  ;;  %714 = vmatprep.subr.bf16.mxu1 %v749_v0  ;;  %v401_v45 = vmax.f32 %v373_v36, 0.0 }
 0x1d8   :  { %v368_v44 = vadd.f32 %v367_v42, %v226_v18  ;;  %v399_v47 = vmax.f32 %v365_v39, 0.0 }
 0x1d9   :  { %v402_v46 = vmax.f32 %v376_v41, 0.0  ;;  %v567_v41 = vpop.permute.xlu0 %566 }
 0x1da   :  { %v400_v48 = vmax.f32 %v368_v44, 0.0  ;;  %692 = vmatpush3.bf16.msra.mxu0 %v413_v33  ;;  %720 = vmatpush3.bf16.msra.mxu1 %v413_v33  ;;  %v562_v44 = vpop.permute.xlu1 %561 }
 0x1db   :  { %v415_v49 = vpack.c.bf16 %v402_v46, %v401_v45  ;;  %693 = vmatprep.subr.bf16.mxu0 %v749_v0  ;;  %715 = vmatprep.subr.bf16.mxu1 %v749_v0 }
 0x1dc   :  { %v414_v51 = vpack.c.bf16 %v400_v48, %v399_v47  ;;  %v687_v52 = vpop.f32.mrb[8].mxu1 }
 0x1dd   :  { %v389_v53 = vadd.f32 %v687_v52, %v251_v50  ;;  %v380_v54 = vpop.f32.mrb[9].mxu1 }
 0x1de   :  { %v381_v56 = vadd.f32 %v380_v54, %v241_v38  ;;  %v688_v57 = vpop.f32.mrb[10].mxu1  ;;  %694 = vmatpush3.bf16.msra.mxu0 %v414_v51  ;;  %721 = vmatpush3.bf16.msra.mxu1 %v414_v51 }
 0x1df   :  { %v392_v58 = vadd.f32 %v688_v57, %v256_v55  ;;  %v383_v59 = vpop.f32.mrb[11].mxu1  ;;  %695 = vmatprep.subr.bf16.mxu0 %v749_v0  ;;  %716 = vmatprep.subr.bf16.mxu1 %v749_v0  ;;  %v405_v61 = vmax.f32 %v389_v53, 0.0 }
 0x1e0   :  { %v384_v60 = vadd.f32 %v383_v59, %v246_v43  ;;  %v403_v1 = vmax.f32 %v381_v56, 0.0  ;;  %v586_v56 = vstv %s984_s8 }
 0x1e1   :  { %v406_v63 = vmax.f32 %v392_v58, 0.0 }
 0x1e2   :  { %v404_v3 = vmax.f32 %v384_v60, 0.0  ;;  %696 = vmatpush3.bf16.msra.mxu0 %v415_v49  ;;  %722 = vmatpush3.bf16.msra.mxu1 %v415_v49 }
 0x1e3   :  { %v417_v4 = vpack.c.bf16 %v406_v63, %v405_v61  ;;  %697 = vmatprep.subr.bf16.mxu0 %v749_v0  ;;  %717 = vmatprep.subr.bf16.mxu1 %v749_v0 }
 0x1e4   :  { %v416_v5 = vpack.c.bf16 %v404_v3, %v403_v1  ;;  %v598_v1 = vld [vmem:[%s985_s9] sm:$0x1] }
 0x1e5   :  { %v476_v7 = vand.u32 %v474_v6, %v417_v4 }
 0x1e6   :  { %698 = vmatpush3.bf16.msra.mxu0 %v416_v5  ;;  %723 = vmatpush3.bf16.msra.mxu1 %v416_v5 }
 0x1e7   :  { %699 = vmatprep.subr.bf16.mxu0 %v749_v0  ;;  %718 = vmatprep.subr.bf16.mxu1 %v749_v0 }
 0x1ea   :  { %700 = vmatpush3.bf16.msra.mxu0 %v476_v7  ;;  %724 = vmatpush3.bf16.msra.mxu1 %v476_v7 }
 0x1ed   :  { %702 = vmatmul.mubr.msk.bf16.vlgmr.msra.gmra.mrb[12].mxu0 %vm461_vm8, %v742_v62  ;;  %710 = vmatmul.mubr.msk.bf16.vlgmr.msra.gmra.mrb[12].mxu1 %vm461_vm8, %v743_v8 }
 0x1ee   :  { %705 = vmatprep.mubr.msk.bf16.mxu0 %vm751_vm1, %v749_v0 }
 0x1f5   :  { %706 = vmatmul.mubr.msk.bf16.gmra.mrb[16].mxu0 %vm461_vm8, %v744_v9 }
 0x2c0   :  { %v512_v16 = vpop.f32.mrb[12].mxu0  ;;  %v528_v17 = vpop.f32.mrb[12].mxu1 }
 0x2c1   :  { %v513_v18 = vadd.f32 %v512_v16, %v426_v11  ;;  %v703_v19 = vpop.f32.mrb[13].mxu0  ;;  %v711_v20 = vpop.f32.mrb[13].mxu1  ;;  %v529_v28 = vadd.f32 %v528_v17, %v446_v26 }
 0x2c2   :  { %v515_v21 = vpop.f32.mrb[14].mxu0  ;;  %v531_v22 = vpop.f32.mrb[14].mxu1 }
 0x2c3   :  { %v534_v23 = vmax.f32 %v513_v18, 0.0  ;;  %v516_v0 = vadd.f32 %v515_v21, %v431_v10  ;;  %v704_v24 = vpop.f32.mrb[15].mxu0  ;;  %v712_v25 = vpop.f32.mrb[15].mxu1  ;;  %v538_v36 = vmax.f32 %v529_v28, 0.0 }
 0x2c5   :  { %v535_v27 = vmax.f32 %v516_v0, 0.0  ;;  %v569_v30 = vmul.f32 %v547_v15, %v534_v23  ;;  %v573_v45 = vmul.f32 %v567_v41, %v538_v36 }
 0x2c7   :  { %v570_v31 = vmul.f32 %v552_v14, %v535_v27  ;;  %v577_v49 = vsel %vm472_vm7, %v573_v45, 0.0 }
 0x2c8   :  { %v520_v32 = vpop.f32.mrb[16].mxu0 }
 0x2c9   :  { %v574_v33 = vadd.f32 %v570_v31, %v569_v30  ;;  %v521_v34 = vadd.f32 %v520_v32, %v436_v13  ;;  %v707_v35 = vpop.f32.mrb[17].mxu0 }
 0x2ca   :  { %v523_v37 = vpop.f32.mrb[18].mxu0 }
 0x2cb   :  { %v536_v38 = vmax.f32 %v521_v34, 0.0  ;;  %v524_v39 = vadd.f32 %v523_v37, %v441_v12  ;;  %v708_v40 = vpop.f32.mrb[19].mxu0 }
 0x2cd   :  { %v571_v42 = vmul.f32 %v557_v29, %v536_v38  ;;  %v537_v43 = vmax.f32 %v524_v39, 0.0 }
 0x2cf   :  { %v575_v46 = vadd.f32 %v574_v33, %v571_v42  ;;  %v572_v47 = vmul.f32 %v562_v44, %v537_v43 }
 0x2d1   :  { %v576_v48 = vadd.f32 %v575_v46, %v572_v47 }
 0x2d3   :  { %v578_v50 = vadd.f32 %v577_v49, %v576_v48 }
 0x2d5   :  { %v579_v51 = vrot.slane %v578_v50, 4 }
 0x2d7   :  { %v580_v52 = vadd.f32 %v579_v51, %v578_v50 }
 0x2d9   :  { %v581_v53 = vrot.slane %v580_v52, 2 }
 0x2db   :  { %v582_v54 = vadd.f32 %v581_v53, %v580_v52 }
 0x2dd   :  { %v583_v55 = vrot.slane %v582_v54, 1 }
 0x2df   :  { %v584_v57 = vadd.f32 %v583_v55, %v582_v54 }
 0x2e1   :  { %v587_v58 = vadd.f32 %v586_v56, %v584_v57 }
 0x2e3   :  { %v631_v59 = vmul.f32 -1.442695, %v587_v58 }
 0x2e5   :  { %745 = vpow2.f32 %v631_v59 }
 0x2ef   :  { %v746_v60 = vpop.eup %745 }
 0x2f0   :  { %v591_v61 = vadd.f32 1.0, %v746_v60 }
 0x2f2   :  { %747 = vrcp.f32 %v591_v61 }
 0x2fc   :  { %v748_v63 = vpop.eup %747 }
 0x2fd   :  { %v594_v2 = vpack.c.bf16 %v748_v63, %v748_v63 }
 0x2ff   :  { %v599_v3 = vsel %vm597_vm10, %v594_v2, %v598_v1 }
 0x300   :  { %600 = vst [vmem:[%s985_s9] sm:$0x1] %v599_v3 }

</bundles_post_ra>
